<compile_context>
chip_gen: v5e
topology: v5e:2x2
jax: 0.10.0
libtpu: 0.0.40
codegen_flags: <defaults>
</compile_context>

<pallas_src>
import functools

import jax
import jax.numpy as jnp
from jax.experimental import pallas as pl
from jax.experimental.pallas import tpu as pltpu

_MR = jnp.array([0.2947, 0.2856, 0.2849], dtype=jnp.float32)
_VR = jnp.array([0.098952, 0.092775, 0.092406], dtype=jnp.float32)

_LANES = 128
_SUBLANES = 8


# --------------------------------------------------------------------------
# Pallas kernel: fused per-row (= per (n, c)) spatial sums of two (R, S) slabs.
# --------------------------------------------------------------------------
def _row_sum_pair_kernel(x_ref, y_ref, ox_ref, oy_ref, *,
                         s_total, tile_s, needs_mask, transform):
    """Accumulates row sums of x and of y (or of clip(x+3-2*clip(y,0,1),0,2))."""
    j = pl.program_id(1)                     # spatial axis = trailing reduction
    last = pl.num_programs(1) - 1

    @pl.when(j == 0)
    def _():
        ox_ref[...] = jnp.zeros_like(ox_ref)
        oy_ref[...] = jnp.zeros_like(oy_ref)

    x = x_ref[...].astype(jnp.float32)
    y = y_ref[...].astype(jnp.float32)
    if transform:
        # Original: z1 = clamp(x + 1 + 2*(1 - clamp(m, 0, 1)), 0, 2) - 1.
        # Fold constants and drop the trailing "-1" (applied in the wrapper as
        # mean_z1 = sum/S - 1); masking the clipped value to 0 keeps it exact.
        y = jnp.clip(x + 3.0 - 2.0 * jnp.clip(y, 0.0, 1.0), 0.0, 2.0)

    def _accum(xv, yv):
        ox_ref[...] += jnp.sum(xv, axis=1, keepdims=True)
        oy_ref[...] += jnp.sum(yv, axis=1, keepdims=True)

    if needs_mask:
        # Mask only the final (partial) spatial block; all other blocks are a
        # plain unmasked load+add, keeping v7x on the HBM roofline.
        @pl.when(j == last)
        def _():
            col = j * tile_s + jax.lax.broadcasted_iota(jnp.int32, x.shape, 1)
            valid = col < s_total
            _accum(jnp.where(valid, x, 0.0), jnp.where(valid, y, 0.0))

        @pl.when(j != last)
        def _():
            _accum(x, y)
    else:
        _accum(x, y)
    # TODO(synk): if bundle dumps ever show XLU / vector-store pressure, move
    # to a lane-wide (tile_r, 128) VMEM accumulator (or MXU ones-vector reduce)
    # with a single cross-lane reduce on the last step.


# --------------------------------------------------------------------------
# Tiling / budget helpers
# --------------------------------------------------------------------------
def _auto_budget(num_inputs):
    """Per-input block byte budget + explicit scoped-VMEM limit, per chip gen."""
    try:
        vmem_cap = int(pltpu.get_tpu_info().vmem_capacity_bytes)
    except Exception:                         # interpret mode / non-TPU backend
        vmem_cap = 64 * 1024 * 1024           # conservative (v7x-sized)
    # Double-buffered pipeline working set kept well inside scoped VMEM:
    #   v5e/v6e (128 MiB physical) -> 24 MiB working set, 32 MiB limit
    #   v7x     ( 64 MiB physical) -> 16 MiB working set, 24 MiB limit
    working = min(vmem_cap // 4, 24 * 1024 * 1024)
    block_bytes = max(1 << 20, working // (2 * num_inputs))
    vmem_limit = int(min(vmem_cap // 2, working + (8 << 20)))
    return block_bytes, vmem_limit


def _choose_tile_r(rows):
    """Two row blocks (multiple of 8 sublanes) for megacore sharding on v7x."""
    if rows >= 2 * _SUBLANES and rows % (2 * _SUBLANES) == 0:
        return rows // 2
    return rows                               # full extent (always legal)


def _choose_tile_s(s_total, n_rows, itemsize, block_bytes):
    """Largest lane-aligned spatial tile within a per-input VMEM budget."""
    if s_total <= _LANES:
        return s_total                        # block == full (short) spatial dim
    rows_pad = max(_SUBLANES, -(-n_rows // _SUBLANES) * _SUBLANES)
    cols_budget = max(_LANES,
                      (block_bytes // (rows_pad * itemsize)) // _LANES * _LANES)
    cols_full = (s_total // _LANES) * _LANES
    return min(cols_budget, cols_full)


# --------------------------------------------------------------------------
# Wrapper around pallas_call
# --------------------------------------------------------------------------
def _spatial_mean_pair(x, y, *, transform):
    """Fused per-(n, c) spatial means of input_f and of the second tensor.

    transform=False: y is input_f_z1, returns (mean(x), mean(y)).
    transform=True : y is input_m, returns (mean(x), mean(clamp-transform(x, m))).
    """
    assert x.shape == y.shape
    n, c, h, w = x.shape
    rows, s_total = n * c, h * w
    x2 = x.reshape(rows, s_total)             # contiguous reshape, no copy
    y2 = y.reshape(rows, s_total)

    itemsize = max(jnp.dtype(x.dtype).itemsize, jnp.dtype(y.dtype).itemsize)
    block_bytes, vmem_limit = _auto_budget(num_inputs=2)
    tile_r = _choose_tile_r(rows)
    tile_s = _choose_tile_s(s_total, tile_r, itemsize, block_bytes)
    grid = (rows // tile_r, pl.cdiv(s_total, tile_s))
    needs_mask = (s_total % tile_s) != 0

    kernel = functools.partial(_row_sum_pair_kernel, s_total=s_total,
                               tile_s=tile_s, needs_mask=needs_mask,
                               transform=transform)
    sums_x, sums_y = pl.pallas_call(
        kernel,
        out_shape=(jax.ShapeDtypeStruct((rows, 1), jnp.float32),
                   jax.ShapeDtypeStruct((rows, 1), jnp.float32)),
        grid_spec=pltpu.PrefetchScalarGridSpec(
            num_scalar_prefetch=0,
            grid=grid,
            in_specs=[pl.BlockSpec((tile_r, tile_s), lambda i, j: (i, j)),
                      pl.BlockSpec((tile_r, tile_s), lambda i, j: (i, j))],
            out_specs=(pl.BlockSpec((tile_r, 1), lambda i, j: (i, 0)),
                       pl.BlockSpec((tile_r, 1), lambda i, j: (i, 0))),
        ),
        compiler_params=pltpu.CompilerParams(
            dimension_semantics=("parallel", "arbitrary"),
            vmem_limit_bytes=vmem_limit),
    )(x2, y2)

    inv_s = 1.0 / float(s_total)
    mean_x = (sums_x[:, 0] * inv_s).reshape(n, c)
    mean_y = (sums_y[:, 0] * inv_s).reshape(n, c)
    if transform:
        mean_y = mean_y - 1.0                 # fold back the "- 1" of the clamp
    return mean_x, mean_y


# --------------------------------------------------------------------------
# SigmaLoss.forward
# --------------------------------------------------------------------------
def _kl_loss(mf, vf, mr, vr):
    kl = -0.5 * (jnp.log(vf / vr) + 1.0 - (1.0 / vr) * (vf + (mr - mf) ** 2))
    return jnp.mean(kl)


def sigma_loss_forward(input_f, input_f_z1=None, input_m=None,
                       lambda_sigma=(1.0, 1.0), mr=_MR, vr=_VR,
                       small_fallback_bytes=2 << 20):
    """JAX/Pallas equivalent of SigmaLoss.forward(input_f, input_f_z1, input_m)."""
    n, c, h, w = input_f.shape
    assert c == int(mr.shape[0]) == int(vr.shape[0]), (
        "channel count must match the mr/vr reference statistics")

    if input_m is not None:
        second, transform = input_m, True
    else:
        assert input_f_z1 is not None
        second, transform = input_f_z1, False

    total_bytes = input_f.size * jnp.dtype(input_f.dtype).itemsize
    if total_bytes < small_fallback_bytes:
        # Tiny activations: pallas_call fixed cost dominates; let XLA fuse it.
        x = input_f.astype(jnp.float32)
        s = second.astype(jnp.float32)
        if transform:
            z1 = jnp.clip(x + 1.0 + 2.0 * (1.0 - jnp.clip(s, 0.0, 1.0)),
                          0.0, 2.0) - 1.0
        else:
            z1 = s
        nc_mean_f = jnp.mean(x, axis=(2, 3))
        nc_mean_z1 = jnp.mean(z1, axis=(2, 3))
    else:
        nc_mean_f, nc_mean_z1 = _spatial_mean_pair(input_f, second,
                                                   transform=transform)

    # minibatch_analysis(input_f, sort=False)
    mf = jnp.mean(nc_mean_f, axis=0)
    vf = jnp.mean((nc_mean_f - mf) ** 2, axis=0)

    # minibatch_analysis(input_f_z1, sort=True)
    mf_z1 = jnp.mean(nc_mean_z1, axis=0)
    vars_z1 = (nc_mean_z1 - mf_z1) ** 2
    vf_z1 = jnp.mean(vars_z1, axis=0)
    unnormal = jnp.sum(vars_z1, axis=1)
    k = min(5, int(unnormal.shape[0]))
    _, top_ids = jax.lax.top_k(unnormal, k)   # == torch.sort(desc=True) ids[:5]
    # (ties may permute vs torch.sort; loss values are unaffected)

    # TODO(synk): the PyTorch module print()s mf/vf debug values; omitted here.
    loss_f = _kl_loss(mf, vf, mr, vr) * lambda_sigma[0]
    loss_z1 = _kl_loss(mf_z1, vf_z1, mr, vr) * lambda_sigma[1]
    return loss_f, loss_z1, top_ids


# --------------------------------------------------------------------------
# Pure-JAX reference (mirrors the PyTorch module)
# --------------------------------------------------------------------------
def sigma_loss_ref(input_f, input_f_z1=None, input_m=None,
                   lambda_sigma=(1.0, 1.0), mr=_MR, vr=_VR):
    x = input_f.astype(jnp.float32)
    if input_m is not None:
        z1 = jnp.clip(x + 1.0 + 2.0 * (1.0 - jnp.clip(
            input_m.astype(jnp.float32), 0.0, 1.0)), 0.0, 2.0) - 1.0
    else:
        z1 = input_f_z1.astype(jnp.float32)

    def mba(a):
        per_nc = jnp.mean(a, axis=(2, 3))
        mean = jnp.mean(per_nc, axis=0)
        vars_ = (per_nc - mean) ** 2
        return mean, jnp.mean(vars_, axis=0), vars_

    mf, vf, _ = mba(x)
    mf_z1, vf_z1, vars_z1 = mba(z1)
    unnormal = jnp.sum(vars_z1, axis=1)
    ids = jnp.argsort(-unnormal)[:5]

    def kl(m, v):
        return jnp.mean(-0.5 * (jnp.log(v / vr) + 1.0
                                - (1.0 / vr) * (v + (mr - m) ** 2)))

    return (kl(mf, vf) * lambda_sigma[0],
            kl(mf_z1, vf_z1) * lambda_sigma[1], ids, unnormal)


if __name__ == "__main__":
    key = jax.random.PRNGKey(0)
    k1, k2, k3 = jax.random.split(key, 3)
    # NCHW activations; C must be 3 to match the module's mr/vr statistics.
    # N >= 3: with N == 2 the per-batch deviations are exactly +/- symmetric,
    # so the 'unnormal' sort is a degenerate tie (the previous test failure).
    n, c, h, w = 4, 3, 16, 16
    input_f = jax.random.normal(k1, (n, c, h, w), dtype=jnp.float32) * 0.3 + 0.3
    input_f_z1 = jax.random.normal(k2, (n, c, h, w), dtype=jnp.float32) * 0.3 + 0.3
    input_m = jax.random.uniform(k3, (n, c, h, w), dtype=jnp.float32)
    lambda_sigma = (0.5, 0.25)

    def check(lf, lz, ids, rf, rz, rids, runn):
        assert jnp.allclose(lf, rf, rtol=1e-4, atol=1e-5), (lf, rf)
        assert jnp.allclose(lz, rz, rtol=1e-4, atol=1e-5), (lz, rz)
        # Index parity checked by VALUE: tolerant of (near-)ties and of tiny
        # summation-order differences between the Pallas and jnp reductions.
        assert jnp.allclose(runn[ids], runn[rids], rtol=1e-4, atol=1e-6), (ids, rids)

    # Path 1: explicit input_f_z1 (input_m=None) -> fused two-input kernel.
    lf, lz, ids = sigma_loss_forward(input_f, input_f_z1,
                                     lambda_sigma=lambda_sigma,
                                     small_fallback_bytes=0)
    lf, lz, ids = jax.block_until_ready((lf, lz, ids))
    rf, rz, rids, runn = sigma_loss_ref(input_f, input_f_z1,
                                        lambda_sigma=lambda_sigma)
    check(lf, lz, ids, rf, rz, rids, runn)

    # Path 2: input_m provided -> clamp transform fused inside the kernel pass.
    lf, lz, ids = sigma_loss_forward(input_f, input_m=input_m,
                                     lambda_sigma=lambda_sigma,
                                     small_fallback_bytes=0)
    lf, lz, ids = jax.block_until_ready((lf, lz, ids))
    rf, rz, rids, runn = sigma_loss_ref(input_f, input_m=input_m,
                                        lambda_sigma=lambda_sigma)
    check(lf, lz, ids, rf, rz, rids, runn)

    print("KERNEL_OK")
</pallas_src>

<mosaic_0001>
module attributes {stable_mosaic.version = 11 : i64} {
  func.func @_row_sum_pair_kernel(%arg0: i32, %arg1: i32, %arg2: memref<12x256xf32, #tpu.memory_space<vmem>>, %arg3: memref<12x256xf32, #tpu.memory_space<vmem>>, %arg4: memref<12x1xf32, #tpu.memory_space<vmem>>, %arg5: memref<12x1xf32, #tpu.memory_space<vmem>>) attributes {dimension_semantics = [#tpu.dimension_semantics<parallel>, #tpu.dimension_semantics<arbitrary>], iteration_bounds = array<i64: 1, 1>, scalar_prefetch = 0 : i64, scratch_operands = 0 : i64, tpu.core_type = #tpu.core_type<tc>, window_params = [{transform_indices = @transform_0, window_bounds = array<i64: 12, 256>}, {transform_indices = @transform_1, window_bounds = array<i64: 12, 256>}, {transform_indices = @transform_2, window_bounds = array<i64: 12, 1>}, {transform_indices = @transform_3, window_bounds = array<i64: 12, 1>}]} {
    %c0_i32 = arith.constant 0 : i32
    %0 = arith.cmpi eq, %arg1, %c0_i32 : i32
    %1 = arith.extui %0 : i1 to i32
    %c0_i32_0 = arith.constant 0 : i32
    %2 = arith.cmpi ne, %1, %c0_i32_0 : i32
    scf.if %2 {
      %cst_13 = arith.constant 0.000000e+00 : f32
      %15 = vector.broadcast %cst_13 : f32 to vector<12x1xf32>
      %c0_14 = arith.constant 0 : index
      %c0_15 = arith.constant 0 : index
      %16 = vector.load %arg4[%c0_14, %c0_15] : memref<12x1xf32, #tpu.memory_space<vmem>>, vector<12x1xf32>
      tpu.vector_store %arg4[%c0_14, %c0_15], %15 {strides = array<i32>} : memref<12x1xf32, #tpu.memory_space<vmem>>, vector<12x1xf32>,
      %cst_16 = arith.constant 0.000000e+00 : f32
      %17 = vector.broadcast %cst_16 : f32 to vector<12x1xf32>
      %c0_17 = arith.constant 0 : index
      %c0_18 = arith.constant 0 : index
      %18 = vector.load %arg5[%c0_17, %c0_18] : memref<12x1xf32, #tpu.memory_space<vmem>>, vector<12x1xf32>
      tpu.vector_store %arg5[%c0_17, %c0_18], %17 {strides = array<i32>} : memref<12x1xf32, #tpu.memory_space<vmem>>, vector<12x1xf32>,
    } else {
    }
    %c0 = arith.constant 0 : index
    %c0_1 = arith.constant 0 : index
    %3 = vector.load %arg2[%c0, %c0_1] : memref<12x256xf32, #tpu.memory_space<vmem>>, vector<12x256xf32>
    %c0_2 = arith.constant 0 : index
    %c0_3 = arith.constant 0 : index
    %4 = vector.load %arg3[%c0_2, %c0_3] : memref<12x256xf32, #tpu.memory_space<vmem>>, vector<12x256xf32>
    %c0_4 = arith.constant 0 : index
    %c0_5 = arith.constant 0 : index
    %5 = vector.load %arg4[%c0_4, %c0_5] : memref<12x1xf32, #tpu.memory_space<vmem>>, vector<12x1xf32>
    %cst = arith.constant dense<0.000000e+00> : vector<12xf32>
    %6 = vector.multi_reduction <add>, %3, %cst [1] : vector<12x256xf32> to vector<12xf32>
    %7 = vector.shape_cast %6 : vector<12xf32> to vector<12x1xf32>
    %8 = arith.addf %5, %7 : vector<12x1xf32>
    %c0_6 = arith.constant 0 : index
    %c0_7 = arith.constant 0 : index
    %9 = vector.load %arg4[%c0_6, %c0_7] : memref<12x1xf32, #tpu.memory_space<vmem>>, vector<12x1xf32>
    tpu.vector_store %arg4[%c0_6, %c0_7], %8 {strides = array<i32>} : memref<12x1xf32, #tpu.memory_space<vmem>>, vector<12x1xf32>,
    %c0_8 = arith.constant 0 : index
    %c0_9 = arith.constant 0 : index
    %10 = vector.load %arg5[%c0_8, %c0_9] : memref<12x1xf32, #tpu.memory_space<vmem>>, vector<12x1xf32>
    %cst_10 = arith.constant dense<0.000000e+00> : vector<12xf32>
    %11 = vector.multi_reduction <add>, %4, %cst_10 [1] : vector<12x256xf32> to vector<12xf32>
    %12 = vector.shape_cast %11 : vector<12xf32> to vector<12x1xf32>
    %13 = arith.addf %10, %12 : vector<12x1xf32>
    %c0_11 = arith.constant 0 : index
    %c0_12 = arith.constant 0 : index
    %14 = vector.load %arg5[%c0_11, %c0_12] : memref<12x1xf32, #tpu.memory_space<vmem>>, vector<12x1xf32>
    tpu.vector_store %arg5[%c0_11, %c0_12], %13 {strides = array<i32>} : memref<12x1xf32, #tpu.memory_space<vmem>>, vector<12x1xf32>,
    return
  }
  func.func @transform_0(%arg0: i32, %arg1: i32) -> (i32, i32) {
    %c0_i32 = arith.constant 0 : i32
    return %arg0, %arg1 : i32, i32
  }
  func.func @transform_1(%arg0: i32, %arg1: i32) -> (i32, i32) {
    %c0_i32 = arith.constant 0 : i32
    return %arg0, %arg1 : i32, i32
  }
  func.func @transform_2(%arg0: i32, %arg1: i32) -> (i32, i32) {
    %c0_i32 = arith.constant 0 : i32
    %c0_i32_0 = arith.constant 0 : i32
    return %arg0, %c0_i32 : i32, i32
  }
  func.func @transform_3(%arg0: i32, %arg1: i32) -> (i32, i32) {
    %c0_i32 = arith.constant 0 : i32
    %c0_i32_0 = arith.constant 0 : i32
    return %arg0, %c0_i32 : i32, i32
  }
}

</mosaic_0001>

<bundles_post_ra>
// kernel: tpu_custom_call.1
= control target key start
LH: loop header
LB: loop body
LE: loop exit
PB: predicated region body
PF: predicated region fallthrough
CT: control target
= control target key end

     0   :  { %9 = vsyncpa [#allocation3], 0  ;;  %s236_s0 = inlined_call_operand.hbm [shape: f32[12,256], index: 0, kind: input, shape index: {}]   ;;  %s237_s1 = inlined_call_operand.hbm [shape: f32[12,256], index: 1, kind: input, shape index: {}]   ;;  %s238_s2 = inlined_call_operand.vmem [shape: f32[12,1], index: 2, kind: output, shape index: {0}]   ;;  %s239_s3 = inlined_call_operand.vmem [shape: f32[12,1], index: 3, kind: output, shape index: {1}]  }
   0x1   :  { %s15_s14 = sshll.u32 %s236_s0, 4  ;;  %s16_s14 = int_to_ptr.hbm [resolvable:$true] %s15_s14 }
   0x2   :  { %10 = vsyncpa [#allocation5], 0  ;;  %s161_s15 = smov [#allocation2]   ;;  %s28_s19 = sshll.u32 %s237_s1, 4  ;;  %s29_s19 = int_to_ptr.hbm [resolvable:$true] %s28_s19 }
   0x3   :  { %s17_s16 = sshll.u32 %s161_s15, 4  ;;  %s162_s20 = smov 256   ;;  %s18_s16 = int_to_ptr.vmem [resolvable:$true] %s17_s16 }
   0x4   :  { %s163_s21 = smov 16   ;;  %s164_s22 = smov [#allocation4]  }
   0x5   :  { %23 = dma.hbm_to_vmem [thread:$0]  %s16_s14, 512, %s18_s16, [#allocation3], %s162_s20, %s162_s20, %s163_s21  }
   0x6   :  { %s30_s23 = sshll.u32 %s164_s22, 4  ;;  %s31_s23 = int_to_ptr.vmem [resolvable:$true] %s30_s23 }
   0x7   :  { %36 = dma.hbm_to_vmem [thread:$0]  %s29_s19, 512, %s31_s23, [#allocation5], %s162_s20, %s162_s20, %s163_s21  }
   0x8   :  { %157 = dma.done.wait [#allocation3], 512  }
   0x9   :  { %158 = vsyncadd [#allocation3], 4294966784 }
   0xa   :  { %159 = dma.done.wait [#allocation5], 512  }
   0xb   :  { %160 = vsyncadd [#allocation5], 4294966784  ;;  %vm49_vm0 = vcmask 7168   ;;  %v165_v0 = vmov 0.0   ;;  %v59_v1 = vld [vmem:[#allocation4] sm:$0xff]  ;;  %v60_v2 = vld [vmem:[#allocation4 + $0x8] sm:$0xff] }
   0xc   :  { %53 = vst.msk [vmem:[%s239_s3] sm:$0xff] %vm49_vm0, %v165_v0  ;;  %v55_v3 = vld [vmem:[#allocation2] sm:$0xff]  ;;  %v82_v4 = vadd.f32 %v60_v2, %v59_v1  ;;  %v56_v5 = vld [vmem:[#allocation2 + $0x8] sm:$0xff]  ;;  %v61_v6 = vld [vmem:[#allocation4 + $0x10] sm:$0xf]  ;;  %vm68_vm1 = vcmask 1043456  }
   0xd   :  { %50 = vst.msk [vmem:[%s238_s2] sm:$0xff] %vm49_vm0, %v165_v0  ;;  %v62_v7 = vld [vmem:[#allocation4 + $0x18] sm:$0xf]  ;;  %v65_v8 = vadd.f32 %v56_v5, %v55_v3  ;;  %v57_v9 = vld [vmem:[#allocation2 + $0x10] sm:$0xf]  ;;  %v85_v11 = vsel %vm68_vm1, %v61_v6, 0.0 }
   0xe   :  { %v58_v10 = vld [vmem:[#allocation2 + $0x18] sm:$0xf]  ;;  %83 = vadd.xlane.f32.xlu1 %v82_v4  ;;  %v86_v12 = vsel %vm68_vm1, %v62_v7, 0.0  ;;  %v69_v13 = vsel %vm68_vm1, %v57_v9, 0.0  ;;  %vm51_vm2 = vcmask 3072  }
   0xf   :  { %66 = vadd.xlane.f32.xlu0 %v65_v8  ;;  %v70_v14 = vsel %vm68_vm1, %v58_v10, 0.0  ;;  %v87_v15 = vadd.f32 %v86_v12, %v85_v11  ;;  %54 = vst.msk [vmem:[%s239_s3 + $0x8] sm:$0xf] %vm51_vm2, %v165_v0 }
  0x10   :  { %v71_v16 = vadd.f32 %v70_v14, %v69_v13  ;;  %52 = vst.msk [vmem:[%s238_s2 + $0x8] sm:$0xf] %vm51_vm2, %v165_v0 }
  0x13   :  { %v80_v17 = vld [vmem:[%s239_s3] sm:$0xff] }
  0x14   :  { %v63_v18 = vld [vmem:[%s238_s2] sm:$0xff] }
  0x16   :  { %88 = vadd.xlane.f32.xlu1 %v87_v15  ;;  %v81_v23 = vld [vmem:[%s239_s3 + $0x8] sm:$0xf] }
  0x17   :  { %72 = vadd.xlane.f32.xlu0 %v71_v16  ;;  %v64_v24 = vld [vmem:[%s238_s2 + $0x8] sm:$0xf] }
  0x81   :  { %v84_v19 = vpop.xlane.xlu1 %83 }
  0x82   :  { %v90_v20 = vadd.f32 %v84_v19, %v80_v17  ;;  %v67_v21 = vpop.xlane.xlu0 %66 }
  0x83   :  { %v74_v22 = vadd.f32 %v67_v21, %v63_v18 }
  0x84   :  { %92 = vst.msk [vmem:[%s239_s3] sm:$0xff] %vm49_vm0, %v90_v20 }
  0x85   :  { %77 = vst.msk [vmem:[%s238_s2] sm:$0xff] %vm49_vm0, %v74_v22 }
  0x89   :  { %v89_v25 = vpop.xlane.xlu1 %88 }
  0x8a   :  { %v91_v26 = vadd.f32 %v89_v25, %v81_v23  ;;  %v73_v27 = vpop.xlane.xlu0 %72 }
  0x8b   :  { %v75_v28 = vadd.f32 %v73_v27, %v64_v24 }
  0x8c   :  { %93 = vst.msk [vmem:[%s239_s3 + $0x8] sm:$0xf] %vm51_vm2, %v91_v26 }
  0x8d   :  { %79 = vst.msk [vmem:[%s238_s2 + $0x8] sm:$0xf] %vm51_vm2, %v75_v28 }
  0x8e   :  { %102 = vsyncpa [#allocation3], 1 }
  0x8f   :  { %103 = vsyncpa [#allocation5], 1 }

</bundles_post_ra>
